<compile_context>
chip_gen: v5e
topology: v5e:2x2
jax: 0.10.0
libtpu: 0.0.40
codegen_flags: <defaults>
</compile_context>

<pallas_src>
import functools

import jax
import jax.numpy as jnp
from jax.experimental import pallas as pl
from jax.experimental.pallas import tpu as pltpu


def rnn_kernel(x_ref, h0_ref, wxh_ref, whh_ref, bh_ref, whq_ref, bq_ref,
               out_ref, hout_ref, hist_ref, *, T, B):
    # ---- 1) Hoisted input projection (no recurrent dependency) ------------
    # x_ref: (T*B, D)  ->  xproj: (T*B, H)
    xproj = (jnp.dot(x_ref[...], wxh_ref[...],
                     preferred_element_type=jnp.float32)
             + bh_ref[...])

    whh = whh_ref[...]  # hoist weight load out of the loop

    # ---- 2) Serial recurrence over T (fully unrolled, static indices) -----
    h = h0_ref[...]                                        # (B, H)
    for t in range(T):
        pre = xproj[t * B:(t + 1) * B, :] + jnp.dot(
            h, whh, preferred_element_type=jnp.float32)    # (B, H)
        h = jnp.maximum(pre, 0.0)                          # ReLU
        hist_ref[t * B:(t + 1) * B, :] = h                 # stash h_t

    # Final hidden state: written exactly once.
    hout_ref[...] = h

    # ---- 3) Deferred output projection + single lane-dense store ----------
    out_ref[...] = (jnp.dot(hist_ref[...], whq_ref[...],
                            preferred_element_type=jnp.float32)
                    + bq_ref[...])                         # (T*B, Q)


def my_rnn_forward(x, h0, W_xh, W_hh, b_h, W_hq, b_q):
    T, B, D = x.shape
    H = W_hh.shape[0]
    Q = W_hq.shape[1]

    x2d = x.reshape(T * B, D)       # time-major flatten; matches torch.cat(dim=0)
    b_h2 = b_h.reshape(1, H)
    b_q2 = b_q.reshape(1, Q)

    kernel = functools.partial(rnn_kernel, T=T, B=B)

    out_logits, h_final = pl.pallas_call(
        kernel,
        out_shape=(
            jax.ShapeDtypeStruct((T * B, Q), jnp.float32),
            jax.ShapeDtypeStruct((B, H), jnp.float32),
        ),
        grid_spec=pltpu.PrefetchScalarGridSpec(
            num_scalar_prefetch=0,
            grid=(1,),
            in_specs=[
                pl.BlockSpec((T * B, D), lambda i: (0, 0)),   # x (flattened)
                pl.BlockSpec((B, H), lambda i: (0, 0)),       # h0
                pl.BlockSpec((D, H), lambda i: (0, 0)),       # W_xh
                pl.BlockSpec((H, H), lambda i: (0, 0)),       # W_hh
                pl.BlockSpec((1, H), lambda i: (0, 0)),       # b_h
                pl.BlockSpec((H, Q), lambda i: (0, 0)),       # W_hq
                pl.BlockSpec((1, Q), lambda i: (0, 0)),       # b_q
            ],
            out_specs=[
                pl.BlockSpec((T * B, Q), lambda i: (0, 0)),   # all logits
                pl.BlockSpec((B, H), lambda i: (0, 0)),       # final hidden
            ],
            scratch_shapes=[pltpu.VMEM((T * B, H), jnp.float32)],  # h history
        ),
        compiler_params=pltpu.CompilerParams(
            dimension_semantics=("arbitrary",),
        ),
    )(x2d, h0, W_xh, W_hh, b_h2, W_hq, b_q2)

    return out_logits, h_final


def reference_forward(x, h0, W_xh, W_hh, b_h, W_hq, b_q):
    T = x.shape[0]
    h = h0
    outs = []
    for i in range(T):
        h = jax.nn.relu(x[i] @ W_xh + h @ W_hh + b_h)
        outs.append(h @ W_hq + b_q)
    return jnp.concatenate(outs, axis=0), h


if __name__ == "__main__":
    # Small shapes consistent with the module's forward.
    T, B, D, H, Q = 8, 4, 8, 32, 16

    key = jax.random.PRNGKey(0)
    kx, kh0, kxh, khh, khq = jax.random.split(key, 5)

    x = jax.random.normal(kx, (T, B, D), dtype=jnp.float32)

    # Deterministic parameter init matching the module's __init__ scheme.
    W_xh = jax.random.normal(kxh, (D, H), dtype=jnp.float32) * 0.01
    W_hh = jax.random.normal(khh, (H, H), dtype=jnp.float32) * 0.01
    b_h = jnp.zeros((H,), dtype=jnp.float32)
    W_hq = jax.random.normal(khq, (H, Q), dtype=jnp.float32) * 0.01
    b_q = jnp.zeros((Q,), dtype=jnp.float32)

    # get_initial_hidden: randn * 0.01 (made deterministic via PRNGKey here).
    h0 = jax.random.normal(kh0, (B, H), dtype=jnp.float32) * 0.01

    out, h_final = my_rnn_forward(x, h0, W_xh, W_hh, b_h, W_hq, b_q)
    jax.block_until_ready((out, h_final))

    out_ref, h_ref = reference_forward(x, h0, W_xh, W_hh, b_h, W_hq, b_q)
    assert out.shape == (T * B, Q)
    assert h_final.shape == (B, H)
    assert jnp.allclose(out, out_ref, atol=1e-5, rtol=1e-5)
    assert jnp.allclose(h_final, h_ref, atol=1e-5, rtol=1e-5)

    print("KERNEL_OK")
</pallas_src>

<mosaic_0001>
module attributes {stable_mosaic.version = 11 : i64} {
  func.func @rnn_kernel(%arg0: i32, %arg1: memref<32x8xf32, #tpu.memory_space<vmem>>, %arg2: memref<4x32xf32, #tpu.memory_space<vmem>>, %arg3: memref<8x32xf32, #tpu.memory_space<vmem>>, %arg4: memref<32x32xf32, #tpu.memory_space<vmem>>, %arg5: memref<1x32xf32, #tpu.memory_space<vmem>>, %arg6: memref<32x16xf32, #tpu.memory_space<vmem>>, %arg7: memref<1x16xf32, #tpu.memory_space<vmem>>, %arg8: memref<32x16xf32, #tpu.memory_space<vmem>>, %arg9: memref<4x32xf32, #tpu.memory_space<vmem>>, %arg10: memref<32x32xf32, #tpu.memory_space<vmem>>) attributes {dimension_semantics = [#tpu.dimension_semantics<arbitrary>], iteration_bounds = array<i64: 1>, scalar_prefetch = 0 : i64, scratch_operands = 1 : i64, tpu.core_type = #tpu.core_type<tc>, window_params = [{pipeline_mode = #tpu.pipeline_mode<synchronous>, transform_indices = @transform_0, window_bounds = array<i64: 32, 8>}, {pipeline_mode = #tpu.pipeline_mode<synchronous>, transform_indices = @transform_1, window_bounds = array<i64: 4, 32>}, {pipeline_mode = #tpu.pipeline_mode<synchronous>, transform_indices = @transform_2, window_bounds = array<i64: 8, 32>}, {pipeline_mode = #tpu.pipeline_mode<synchronous>, transform_indices = @transform_3, window_bounds = array<i64: 32, 32>}, {pipeline_mode = #tpu.pipeline_mode<synchronous>, transform_indices = @transform_4, window_bounds = array<i64: 1, 32>}, {pipeline_mode = #tpu.pipeline_mode<synchronous>, transform_indices = @transform_5, window_bounds = array<i64: 32, 16>}, {pipeline_mode = #tpu.pipeline_mode<synchronous>, transform_indices = @transform_6, window_bounds = array<i64: 1, 16>}, {pipeline_mode = #tpu.pipeline_mode<synchronous>, transform_indices = @transform_7, window_bounds = array<i64: 32, 16>}, {pipeline_mode = #tpu.pipeline_mode<synchronous>, transform_indices = @transform_8, window_bounds = array<i64: 4, 32>}]} {
    %c0 = arith.constant 0 : index
    %c0_0 = arith.constant 0 : index
    %0 = vector.load %arg1[%c0, %c0_0] : memref<32x8xf32, #tpu.memory_space<vmem>>, vector<32x8xf32>
    %c0_1 = arith.constant 0 : index
    %c0_2 = arith.constant 0 : index
    %1 = vector.load %arg3[%c0_1, %c0_2] : memref<8x32xf32, #tpu.memory_space<vmem>>, vector<8x32xf32>
    %cst = arith.constant dense<0.000000e+00> : vector<32x32xf32>
    %2 = tpu.matmul %0, %1, %cst {dimension_numbers = #tpu.dot_dimension_numbers<[1], [0], [0], [1], [0, 0, 1, 1], [], []>} : vector<32x8xf32>, vector<8x32xf32>, vector<32x32xf32> -> vector<32x32xf32>
    %c0_3 = arith.constant 0 : index
    %c0_4 = arith.constant 0 : index
    %3 = vector.load %arg5[%c0_3, %c0_4] : memref<1x32xf32, #tpu.memory_space<vmem>>, vector<1x32xf32>
    %4 = vector.broadcast %3 : vector<1x32xf32> to vector<32x32xf32>
    %5 = arith.addf %2, %4 : vector<32x32xf32>
    %c0_5 = arith.constant 0 : index
    %c0_6 = arith.constant 0 : index
    %6 = vector.load %arg4[%c0_5, %c0_6] : memref<32x32xf32, #tpu.memory_space<vmem>>, vector<32x32xf32>
    %c0_7 = arith.constant 0 : index
    %c0_8 = arith.constant 0 : index
    %7 = vector.load %arg2[%c0_7, %c0_8] : memref<4x32xf32, #tpu.memory_space<vmem>>, vector<4x32xf32>
    %8 = vector.extract_strided_slice %5 {offsets = [0, 0], sizes = [4, 32], strides = [1, 1]} : vector<32x32xf32> to vector<4x32xf32>
    %cst_9 = arith.constant dense<0.000000e+00> : vector<4x32xf32>
    %9 = tpu.matmul %7, %6, %cst_9 {dimension_numbers = #tpu.dot_dimension_numbers<[1], [0], [0], [1], [0, 0, 1, 1], [], []>} : vector<4x32xf32>, vector<32x32xf32>, vector<4x32xf32> -> vector<4x32xf32>
    %10 = arith.addf %8, %9 : vector<4x32xf32>
    %cst_10 = arith.constant 0.000000e+00 : f32
    %11 = vector.broadcast %cst_10 : f32 to vector<4x32xf32>
    %12 = arith.maximumf %10, %11 : vector<4x32xf32>
    %c0_11 = arith.constant 0 : index
    %c0_12 = arith.constant 0 : index
    %13 = vector.load %arg10[%c0_11, %c0_12] : memref<32x32xf32, #tpu.memory_space<vmem>>, vector<4x32xf32>
    tpu.vector_store %arg10[%c0_11, %c0_12], %12 {strides = array<i32>} : memref<32x32xf32, #tpu.memory_space<vmem>>, vector<4x32xf32>,
    %14 = vector.extract_strided_slice %5 {offsets = [4, 0], sizes = [4, 32], strides = [1, 1]} : vector<32x32xf32> to vector<4x32xf32>
    %cst_13 = arith.constant dense<0.000000e+00> : vector<4x32xf32>
    %15 = tpu.matmul %12, %6, %cst_13 {dimension_numbers = #tpu.dot_dimension_numbers<[1], [0], [0], [1], [0, 0, 1, 1], [], []>} : vector<4x32xf32>, vector<32x32xf32>, vector<4x32xf32> -> vector<4x32xf32>
    %16 = arith.addf %14, %15 : vector<4x32xf32>
    %cst_14 = arith.constant 0.000000e+00 : f32
    %17 = vector.broadcast %cst_14 : f32 to vector<4x32xf32>
    %18 = arith.maximumf %16, %17 : vector<4x32xf32>
    %c4 = arith.constant 4 : index
    %c0_15 = arith.constant 0 : index
    %19 = vector.load %arg10[%c4, %c0_15] : memref<32x32xf32, #tpu.memory_space<vmem>>, vector<4x32xf32>
    tpu.vector_store %arg10[%c4, %c0_15], %18 {strides = array<i32>} : memref<32x32xf32, #tpu.memory_space<vmem>>, vector<4x32xf32>,
    %20 = vector.extract_strided_slice %5 {offsets = [8, 0], sizes = [4, 32], strides = [1, 1]} : vector<32x32xf32> to vector<4x32xf32>
    %cst_16 = arith.constant dense<0.000000e+00> : vector<4x32xf32>
    %21 = tpu.matmul %18, %6, %cst_16 {dimension_numbers = #tpu.dot_dimension_numbers<[1], [0], [0], [1], [0, 0, 1, 1], [], []>} : vector<4x32xf32>, vector<32x32xf32>, vector<4x32xf32> -> vector<4x32xf32>
    %22 = arith.addf %20, %21 : vector<4x32xf32>
    %cst_17 = arith.constant 0.000000e+00 : f32
    %23 = vector.broadcast %cst_17 : f32 to vector<4x32xf32>
    %24 = arith.maximumf %22, %23 : vector<4x32xf32>
    %c8 = arith.constant 8 : index
    %c0_18 = arith.constant 0 : index
    %25 = vector.load %arg10[%c8, %c0_18] : memref<32x32xf32, #tpu.memory_space<vmem>>, vector<4x32xf32>
    tpu.vector_store %arg10[%c8, %c0_18], %24 {strides = array<i32>} : memref<32x32xf32, #tpu.memory_space<vmem>>, vector<4x32xf32>,
    %26 = vector.extract_strided_slice %5 {offsets = [12, 0], sizes = [4, 32], strides = [1, 1]} : vector<32x32xf32> to vector<4x32xf32>
    %cst_19 = arith.constant dense<0.000000e+00> : vector<4x32xf32>
    %27 = tpu.matmul %24, %6, %cst_19 {dimension_numbers = #tpu.dot_dimension_numbers<[1], [0], [0], [1], [0, 0, 1, 1], [], []>} : vector<4x32xf32>, vector<32x32xf32>, vector<4x32xf32> -> vector<4x32xf32>
    %28 = arith.addf %26, %27 : vector<4x32xf32>
    %cst_20 = arith.constant 0.000000e+00 : f32
    %29 = vector.broadcast %cst_20 : f32 to vector<4x32xf32>
    %30 = arith.maximumf %28, %29 : vector<4x32xf32>
    %c12 = arith.constant 12 : index
    %c0_21 = arith.constant 0 : index
    %31 = vector.load %arg10[%c12, %c0_21] : memref<32x32xf32, #tpu.memory_space<vmem>>, vector<4x32xf32>
    tpu.vector_store %arg10[%c12, %c0_21], %30 {strides = array<i32>} : memref<32x32xf32, #tpu.memory_space<vmem>>, vector<4x32xf32>,
    %32 = vector.extract_strided_slice %5 {offsets = [16, 0], sizes = [4, 32], strides = [1, 1]} : vector<32x32xf32> to vector<4x32xf32>
    %cst_22 = arith.constant dense<0.000000e+00> : vector<4x32xf32>
    %33 = tpu.matmul %30, %6, %cst_22 {dimension_numbers = #tpu.dot_dimension_numbers<[1], [0], [0], [1], [0, 0, 1, 1], [], []>} : vector<4x32xf32>, vector<32x32xf32>, vector<4x32xf32> -> vector<4x32xf32>
    %34 = arith.addf %32, %33 : vector<4x32xf32>
    %cst_23 = arith.constant 0.000000e+00 : f32
    %35 = vector.broadcast %cst_23 : f32 to vector<4x32xf32>
    %36 = arith.maximumf %34, %35 : vector<4x32xf32>
    %c16 = arith.constant 16 : index
    %c0_24 = arith.constant 0 : index
    %37 = vector.load %arg10[%c16, %c0_24] : memref<32x32xf32, #tpu.memory_space<vmem>>, vector<4x32xf32>
    tpu.vector_store %arg10[%c16, %c0_24], %36 {strides = array<i32>} : memref<32x32xf32, #tpu.memory_space<vmem>>, vector<4x32xf32>,
    %38 = vector.extract_strided_slice %5 {offsets = [20, 0], sizes = [4, 32], strides = [1, 1]} : vector<32x32xf32> to vector<4x32xf32>
    %cst_25 = arith.constant dense<0.000000e+00> : vector<4x32xf32>
    %39 = tpu.matmul %36, %6, %cst_25 {dimension_numbers = #tpu.dot_dimension_numbers<[1], [0], [0], [1], [0, 0, 1, 1], [], []>} : vector<4x32xf32>, vector<32x32xf32>, vector<4x32xf32> -> vector<4x32xf32>
    %40 = arith.addf %38, %39 : vector<4x32xf32>
    %cst_26 = arith.constant 0.000000e+00 : f32
    %41 = vector.broadcast %cst_26 : f32 to vector<4x32xf32>
    %42 = arith.maximumf %40, %41 : vector<4x32xf32>
    %c20 = arith.constant 20 : index
    %c0_27 = arith.constant 0 : index
    %43 = vector.load %arg10[%c20, %c0_27] : memref<32x32xf32, #tpu.memory_space<vmem>>, vector<4x32xf32>
    tpu.vector_store %arg10[%c20, %c0_27], %42 {strides = array<i32>} : memref<32x32xf32, #tpu.memory_space<vmem>>, vector<4x32xf32>,
    %44 = vector.extract_strided_slice %5 {offsets = [24, 0], sizes = [4, 32], strides = [1, 1]} : vector<32x32xf32> to vector<4x32xf32>
    %cst_28 = arith.constant dense<0.000000e+00> : vector<4x32xf32>
    %45 = tpu.matmul %42, %6, %cst_28 {dimension_numbers = #tpu.dot_dimension_numbers<[1], [0], [0], [1], [0, 0, 1, 1], [], []>} : vector<4x32xf32>, vector<32x32xf32>, vector<4x32xf32> -> vector<4x32xf32>
    %46 = arith.addf %44, %45 : vector<4x32xf32>
    %cst_29 = arith.constant 0.000000e+00 : f32
    %47 = vector.broadcast %cst_29 : f32 to vector<4x32xf32>
    %48 = arith.maximumf %46, %47 : vector<4x32xf32>
    %c24 = arith.constant 24 : index
    %c0_30 = arith.constant 0 : index
    %49 = vector.load %arg10[%c24, %c0_30] : memref<32x32xf32, #tpu.memory_space<vmem>>, vector<4x32xf32>
    tpu.vector_store %arg10[%c24, %c0_30], %48 {strides = array<i32>} : memref<32x32xf32, #tpu.memory_space<vmem>>, vector<4x32xf32>,
    %50 = vector.extract_strided_slice %5 {offsets = [28, 0], sizes = [4, 32], strides = [1, 1]} : vector<32x32xf32> to vector<4x32xf32>
    %cst_31 = arith.constant dense<0.000000e+00> : vector<4x32xf32>
    %51 = tpu.matmul %48, %6, %cst_31 {dimension_numbers = #tpu.dot_dimension_numbers<[1], [0], [0], [1], [0, 0, 1, 1], [], []>} : vector<4x32xf32>, vector<32x32xf32>, vector<4x32xf32> -> vector<4x32xf32>
    %52 = arith.addf %50, %51 : vector<4x32xf32>
    %cst_32 = arith.constant 0.000000e+00 : f32
    %53 = vector.broadcast %cst_32 : f32 to vector<4x32xf32>
    %54 = arith.maximumf %52, %53 : vector<4x32xf32>
    %c28 = arith.constant 28 : index
    %c0_33 = arith.constant 0 : index
    %55 = vector.load %arg10[%c28, %c0_33] : memref<32x32xf32, #tpu.memory_space<vmem>>, vector<4x32xf32>
    tpu.vector_store %arg10[%c28, %c0_33], %54 {strides = array<i32>} : memref<32x32xf32, #tpu.memory_space<vmem>>, vector<4x32xf32>,
    %c0_34 = arith.constant 0 : index
    %c0_35 = arith.constant 0 : index
    %56 = vector.load %arg9[%c0_34, %c0_35] : memref<4x32xf32, #tpu.memory_space<vmem>>, vector<4x32xf32>
    tpu.vector_store %arg9[%c0_34, %c0_35], %54 {strides = array<i32>} : memref<4x32xf32, #tpu.memory_space<vmem>>, vector<4x32xf32>,
    %c0_36 = arith.constant 0 : index
    %c0_37 = arith.constant 0 : index
    %57 = vector.load %arg10[%c0_36, %c0_37] : memref<32x32xf32, #tpu.memory_space<vmem>>, vector<32x32xf32>
    %c0_38 = arith.constant 0 : index
    %c0_39 = arith.constant 0 : index
    %58 = vector.load %arg6[%c0_38, %c0_39] : memref<32x16xf32, #tpu.memory_space<vmem>>, vector<32x16xf32>
    %cst_40 = arith.constant dense<0.000000e+00> : vector<32x16xf32>
    %59 = tpu.matmul %57, %58, %cst_40 {dimension_numbers = #tpu.dot_dimension_numbers<[1], [0], [0], [1], [0, 0, 1, 1], [], []>} : vector<32x32xf32>, vector<32x16xf32>, vector<32x16xf32> -> vector<32x16xf32>
    %c0_41 = arith.constant 0 : index
    %c0_42 = arith.constant 0 : index
    %60 = vector.load %arg7[%c0_41, %c0_42] : memref<1x16xf32, #tpu.memory_space<vmem>>, vector<1x16xf32>
    %61 = vector.broadcast %60 : vector<1x16xf32> to vector<32x16xf32>
    %62 = arith.addf %59, %61 : vector<32x16xf32>
    %c0_43 = arith.constant 0 : index
    %c0_44 = arith.constant 0 : index
    %63 = vector.load %arg8[%c0_43, %c0_44] : memref<32x16xf32, #tpu.memory_space<vmem>>, vector<32x16xf32>
    tpu.vector_store %arg8[%c0_43, %c0_44], %62 {strides = array<i32>} : memref<32x16xf32, #tpu.memory_space<vmem>>, vector<32x16xf32>,
    return
  }
  func.func @transform_0(%arg0: i32) -> (i32, i32) {
    %c0_i32 = arith.constant 0 : i32
    %c0_i32_0 = arith.constant 0 : i32
    %c0_i32_1 = arith.constant 0 : i32
    return %c0_i32, %c0_i32_0 : i32, i32
  }
  func.func @transform_1(%arg0: i32) -> (i32, i32) {
    %c0_i32 = arith.constant 0 : i32
    %c0_i32_0 = arith.constant 0 : i32
    %c0_i32_1 = arith.constant 0 : i32
    return %c0_i32, %c0_i32_0 : i32, i32
  }
  func.func @transform_2(%arg0: i32) -> (i32, i32) {
    %c0_i32 = arith.constant 0 : i32
    %c0_i32_0 = arith.constant 0 : i32
    %c0_i32_1 = arith.constant 0 : i32
    return %c0_i32, %c0_i32_0 : i32, i32
  }
  func.func @transform_3(%arg0: i32) -> (i32, i32) {
    %c0_i32 = arith.constant 0 : i32
    %c0_i32_0 = arith.constant 0 : i32
    %c0_i32_1 = arith.constant 0 : i32
    return %c0_i32, %c0_i32_0 : i32, i32
  }
  func.func @transform_4(%arg0: i32) -> (i32, i32) {
    %c0_i32 = arith.constant 0 : i32
    %c0_i32_0 = arith.constant 0 : i32
    %c0_i32_1 = arith.constant 0 : i32
    return %c0_i32, %c0_i32_0 : i32, i32
  }
  func.func @transform_5(%arg0: i32) -> (i32, i32) {
    %c0_i32 = arith.constant 0 : i32
    %c0_i32_0 = arith.constant 0 : i32
    %c0_i32_1 = arith.constant 0 : i32
    return %c0_i32, %c0_i32_0 : i32, i32
  }
  func.func @transform_6(%arg0: i32) -> (i32, i32) {
    %c0_i32 = arith.constant 0 : i32
    %c0_i32_0 = arith.constant 0 : i32
    %c0_i32_1 = arith.constant 0 : i32
    return %c0_i32, %c0_i32_0 : i32, i32
  }
  func.func @transform_7(%arg0: i32) -> (i32, i32) {
    %c0_i32 = arith.constant 0 : i32
    %c0_i32_0 = arith.constant 0 : i32
    %c0_i32_1 = arith.constant 0 : i32
    return %c0_i32, %c0_i32_0 : i32, i32
  }
  func.func @transform_8(%arg0: i32) -> (i32, i32) {
    %c0_i32 = arith.constant 0 : i32
    %c0_i32_0 = arith.constant 0 : i32
    %c0_i32_1 = arith.constant 0 : i32
    return %c0_i32, %c0_i32_0 : i32, i32
  }
}

</mosaic_0001>

<bundles_post_ra>
// kernel: tpu_custom_call.1
= control target key start
LH: loop header
LB: loop body
LE: loop exit
PB: predicated region body
PF: predicated region fallthrough
CT: control target
= control target key end

     0   :  { %vm38_vm0 = vcmask 64512   ;;  %s625_s0 = inlined_call_operand.vmem [shape: f32[32,8], index: 0, kind: input, shape index: {}]   ;;  %s626_s1 = inlined_call_operand.vmem [shape: f32[4,32], index: 1, kind: input, shape index: {}]   ;;  %s627_s2 = inlined_call_operand.vmem [shape: f32[8,32], index: 2, kind: input, shape index: {}]   ;;  %s628_s3 = inlined_call_operand.vmem [shape: f32[32,32], index: 3, kind: input, shape index: {}]   ;;  %s629_s4 = inlined_call_operand.vmem [shape: f32[1,32], index: 4, kind: input, shape index: {}]   ;;  %s630_s5 = inlined_call_operand.vmem [shape: f32[32,16], index: 5, kind: input, shape index: {}]   ;;  %s631_s6 = inlined_call_operand.vmem [shape: f32[1,16], index: 6, kind: input, shape index: {}]   ;;  %s632_s7 = inlined_call_operand.vmem [shape: f32[32,16], index: 7, kind: output, shape index: {0}]   ;;  %s633_s8 = inlined_call_operand.hbm [shape: f32[4,32], index: 8, kind: output, shape index: {1}]  }
   0x1   :  { %v484_v0 = vld [vmem:[%s628_s3 + $0x18] sm:$0xff]  ;;  %v489_v1 = vld [vmem:[%s628_s3 + $0x10] sm:$0xff]  ;;  %v33_v2 = vld [vmem:[%s627_s2] sm:$0xff] }
   0x2   :  { %101 = vmatpush.msra.mxu1 %v484_v0  ;;  %66 = vmatpush.msra.mxu0 %v33_v2  ;;  %v29_v3 = vld [vmem:[%s625_s0] sm:$0xff]  ;;  %v501_v4 = vld [vmem:[%s628_s3 + $0x8] sm:$0xff] }
   0x3   :  { %390 = vmatmul.msk.f32.vlgmr.msra.gmra.mxu0 %vm38_vm0, %v29_v3  ;;  %128 = vmatpush.msra.mxu2 %v484_v0 }
   0x4   :  { %102 = vmatpush.msra.mxu1 %v489_v1 }
   0x5   :  { %14 = vsyncpa [#allocation4], 0  ;;  %v509_v5 = vld [vmem:[%s628_s3] sm:$0xff]  ;;  %129 = vmatpush.msra.mxu2 %v489_v1  ;;  %vm85_vm1 = vcmask 261120   ;;  %vm111_vm2 = vcmask 257024   ;;  %v30_v13 = vld [vmem:[%s625_s0 + $0x8] sm:$0xff] }
   0x6   :  { %103 = vmatpush.msra.mxu1 %v501_v4  ;;  %v84_v6 = vld [vmem:[%s626_s1] sm:$0xf]  ;;  %v319_v14 = vld [vmem:[%s630_s5 + $0x18] sm:$0xff]  ;;  %v318_v15 = vld [vmem:[%s630_s5 + $0x10] sm:$0xff]  ;;  %vm141_vm3 = vcmask 261124   ;;  %vm365_vm4 = vcmask 130048  }
   0x7   :  { %130 = vmatpush.msra.mxu2 %v501_v4  ;;  %v535_v7 = vld [vmem:[%s629_s4] ss:$0 sm:$0xff]  ;;  %348 = vmatpush.msra.mxu3 %v319_v14  ;;  %v317_v16 = vld [vmem:[%s630_s5 + $0x8] sm:$0xff]  ;;  %v31_v32 = vld [vmem:[%s625_s0 + $0x10] sm:$0xff]  ;;  %s435_s14 = smov [#allocation3]   ;;  %s379_s17 = sshll.u32 %s633_s8, 4  ;;  %s380_s17 = int_to_ptr.hbm [resolvable:$true] %s379_s17 }
   0x8   :  { %104 = vmatpush.msra.mxu1 %v509_v5  ;;  %v316_v17 = vld [vmem:[%s630_s5] sm:$0xff]  ;;  %v32_v46 = vld [vmem:[%s625_s0 + $0x18] sm:$0xff]  ;;  %s377_s2 = sshll.u32 %s435_s14, 4  ;;  %s378_s2 = int_to_ptr.vmem [resolvable:$true] %s377_s2 }
   0x9   :  { %394 = vmatmul.msk.f32.vlgmr.msra.gmra.mxu1 %vm85_vm1, %v84_v6  ;;  %131 = vmatpush.msra.mxu2 %v509_v5  ;;  %v573_v29 = vld [vmem:[%s631_s6] ss:$0 sm:$0xff] }
   0xa   :  { %159 = vmatpush.msrb.mxu1 %v484_v0  ;;  %349 = vmatpush.msra.mxu3 %v318_v15 }
   0xb   :  { %215 = vmatpush.msrb.mxu2 %v484_v0  ;;  %391 = vmatmul.msk.f32.gmra.mxu0 %vm38_vm0, %v30_v13 }
   0xc   :  { %160 = vmatpush.msrb.mxu1 %v489_v1  ;;  %350 = vmatpush.msra.mxu3 %v317_v16 }
   0xd   :  { %216 = vmatpush.msrb.mxu2 %v489_v1 }
   0xe   :  { %161 = vmatpush.msrb.mxu1 %v501_v4  ;;  %351 = vmatpush.msra.mxu3 %v316_v17 }
   0xf   :  { %217 = vmatpush.msrb.mxu2 %v501_v4 }
  0x10   :  { %162 = vmatpush.msrb.mxu1 %v509_v5 }
  0x11   :  { %218 = vmatpush.msrb.mxu2 %v509_v5 }
  0x12   :  { %185 = vmatpush.msra.mxu1 %v484_v0 }
  0x13   :  { %392 = vmatmul.msk.f32.gmra.mxu0 %vm38_vm0, %v31_v32 }
  0x14   :  { %186 = vmatpush.msra.mxu1 %v489_v1 }
  0x16   :  { %187 = vmatpush.msra.mxu1 %v501_v4 }
  0x18   :  { %188 = vmatpush.msra.mxu1 %v509_v5 }
  0x1b   :  { %393 = vmatmul.msk.f32.gmra.mxu0 %vm38_vm0, %v32_v46 }
  0x80   :  { %v68_v8 = vpop.f32.mrf.mxu0 }
  0x81   :  { %v69_v9 = vadd.f32 %v535_v7, %v68_v8 }
  0x86   :  { %v106_v10 = vpop.f32.mrf.mxu1 }
  0x87   :  { %v109_v11 = vadd.f32 %v106_v10, %v69_v9 }
  0x88   :  { %v71_v24 = vpop.f32.mrf.mxu0 }
  0x89   :  { %v110_v12 = vmax.f32 %v109_v11, 0.0  ;;  %v72_v25 = vadd.f32 %v535_v7, %v71_v24 }
  0x8b   :  { %112 = vst.msk [vmem:[#allocation2] sm:$0xf] %vm111_vm2, %v110_v12  ;;  %395 = vmatmul.msk.f32.vlgmr.msra.gmra.mxu2 %vm85_vm1, %v110_v12 }
  0x8c   :  { %241 = vmatpush.msra.mxu2 %v484_v0 }
  0x8e   :  { %242 = vmatpush.msra.mxu2 %v489_v1 }
  0x90   :  { %243 = vmatpush.msra.mxu2 %v501_v4  ;;  %v74_v39 = vpop.f32.mrf.mxu0 }
  0x91   :  { %v75_v40 = vadd.f32 %v535_v7, %v74_v39 }
  0x92   :  { %244 = vmatpush.msra.mxu2 %v509_v5 }
  0x98   :  { %v77_v53 = vpop.f32.mrf.mxu0 }
  0x99   :  { %v78_v54 = vadd.f32 %v535_v7, %v77_v53 }
 0x10e   :  { %v133_v18 = vpop.f32.mrf.mxu2 }
 0x10f   :  { %v137_v19 = vrot.slane %v133_v18, 4 }
 0x111   :  { %v139_v20 = vadd.f32 %v137_v19, %v69_v9 }
 0x113   :  { %v140_v21 = vmax.f32 %v139_v20, 0.0 }
 0x115   :  { %142 = vst.msk [vmem:[#allocation2] sm:$0xf0] %vm141_vm3, %v140_v21  ;;  %v144_v22 = vrot.slane %v140_v21, 4 }
 0x117   :  { %396 = vmatmul.msk.f32.vlgmr.msrb.gmra.mxu1 %vm85_vm1, %v144_v22 }
 0x118   :  { %271 = vmatpush.msrb.mxu1 %v484_v0 }
 0x11a   :  { %272 = vmatpush.msrb.mxu1 %v489_v1 }
 0x11c   :  { %v312_v23 = vld [vmem:[#allocation2] sm:$0xff]  ;;  %273 = vmatpush.msrb.mxu1 %v501_v4 }
 0x11d   :  { %402 = vmatmul.msk.f32.vlgmr.msra.gmra.mxu3 %vm85_vm1, %v312_v23 }
 0x11e   :  { %274 = vmatpush.msrb.mxu1 %v509_v5 }
 0x194   :  { %v164_v26 = vpop.f32.mrf.mxu1 }
 0x195   :  { %v167_v27 = vadd.f32 %v164_v26, %v72_v25 }
 0x197   :  { %v168_v28 = vmax.f32 %v167_v27, 0.0 }
 0x199   :  { %169 = vst.msk [vmem:[#allocation2 + $0x8] sm:$0xf] %vm111_vm2, %v168_v28  ;;  %397 = vmatmul.msk.f32.vlgmr.msra.gmra.mxu1 %vm85_vm1, %v168_v28 }
 0x1a0   :  { %v353_v30 = vpop.f32.mrf.mxu3 }
 0x1a1   :  { %v354_v31 = vadd.f32 %v573_v29, %v353_v30 }
 0x1a3   :  { %366 = vst.msk [vmem:[%s632_s7] sm:$0xff] %vm365_vm4, %v354_v31 }
 0x216   :  { %v190_v33 = vpop.f32.mrf.mxu1 }
 0x217   :  { %v194_v34 = vrot.slane %v190_v33, 4 }
 0x219   :  { %v196_v35 = vadd.f32 %v194_v34, %v72_v25 }
 0x21b   :  { %v197_v36 = vmax.f32 %v196_v35, 0.0 }
 0x21d   :  { %198 = vst.msk [vmem:[#allocation2 + $0x8] sm:$0xf0] %vm141_vm3, %v197_v36  ;;  %v200_v37 = vrot.slane %v197_v36, 4 }
 0x21f   :  { %398 = vmatmul.msk.f32.vlgmr.msrb.gmra.mxu2 %vm85_vm1, %v200_v37 }
 0x220   :  { %297 = vmatpush.msrb.mxu2 %v484_v0 }
 0x222   :  { %298 = vmatpush.msrb.mxu2 %v489_v1 }
 0x224   :  { %v313_v38 = vld [vmem:[#allocation2 + $0x8] sm:$0xff]  ;;  %299 = vmatpush.msrb.mxu2 %v501_v4 }
 0x225   :  { %403 = vmatmul.msk.f32.gmra.mxu3 %vm85_vm1, %v313_v38 }
 0x226   :  { %300 = vmatpush.msrb.mxu2 %v509_v5 }
 0x2a2   :  { %v220_v41 = vpop.f32.mrf.mxu2 }
 0x2a3   :  { %v223_v42 = vadd.f32 %v220_v41, %v75_v40 }
 0x2a5   :  { %v224_v43 = vmax.f32 %v223_v42, 0.0 }
 0x2a7   :  { %225 = vst.msk [vmem:[#allocation2 + $0x10] sm:$0xf] %vm111_vm2, %v224_v43  ;;  %399 = vmatmul.msk.f32.vlgmr.msra.gmra.mxu2 %vm85_vm1, %v224_v43 }
 0x2a8   :  { %v356_v44 = vpop.f32.mrf.mxu3 }
 0x2a9   :  { %v357_v45 = vadd.f32 %v573_v29, %v356_v44 }
 0x2ab   :  { %367 = vst.msk [vmem:[%s632_s7 + $0x8] sm:$0xff] %vm365_vm4, %v357_v45 }
 0x32a   :  { %v246_v47 = vpop.f32.mrf.mxu2 }
 0x32b   :  { %v250_v48 = vrot.slane %v246_v47, 4 }
 0x32d   :  { %v252_v49 = vadd.f32 %v250_v48, %v75_v40 }
 0x32f   :  { %v253_v50 = vmax.f32 %v252_v49, 0.0 }
 0x331   :  { %254 = vst.msk [vmem:[#allocation2 + $0x10] sm:$0xf0] %vm141_vm3, %v253_v50  ;;  %v256_v51 = vrot.slane %v253_v50, 4 }
 0x333   :  { %400 = vmatmul.msk.f32.vlgmr.msrb.gmra.mxu1 %vm85_vm1, %v256_v51 }
 0x338   :  { %v314_v52 = vld [vmem:[#allocation2 + $0x10] sm:$0xff] }
 0x339   :  { %404 = vmatmul.msk.f32.gmra.mxu3 %vm85_vm1, %v314_v52 }
 0x3b0   :  { %v276_v55 = vpop.f32.mrf.mxu1 }
 0x3b1   :  { %v279_v56 = vadd.f32 %v276_v55, %v78_v54 }
 0x3b3   :  { %v280_v57 = vmax.f32 %v279_v56, 0.0 }
 0x3b5   :  { %281 = vst.msk [vmem:[#allocation2 + $0x18] sm:$0xf] %vm111_vm2, %v280_v57  ;;  %401 = vmatmul.msk.f32.vlgmr.msrb.gmra.mxu2 %vm85_vm1, %v280_v57 }
 0x3bc   :  { %v359_v58 = vpop.f32.mrf.mxu3 }
 0x3bd   :  { %v360_v59 = vadd.f32 %v573_v29, %v359_v58 }
 0x3bf   :  { %368 = vst.msk [vmem:[%s632_s7 + $0x10] sm:$0xff] %vm365_vm4, %v360_v59 }
 0x438   :  { %v302_v60 = vpop.f32.mrf.mxu2 }
 0x439   :  { %v306_v61 = vrot.slane %v302_v60, 4 }
 0x43b   :  { %v308_v62 = vadd.f32 %v306_v61, %v78_v54 }
 0x43d   :  { %v309_v63 = vmax.f32 %v308_v62, 0.0 }
 0x43f   :  { %310 = vst.msk [vmem:[#allocation2 + $0x18] sm:$0xf0] %vm141_vm3, %v309_v63 }
 0x440   :  { %311 = vst.msk [vmem:[#allocation3 - $0x4] sm:$0xf0] %vm141_vm3, %v309_v63 }
 0x441   :  { %382 = dma.vmem_to_hbm [thread:$0]  %s378_s2, 64, %s380_s17, [#allocation4]  }
 0x446   :  { %v315_v0 = vld [vmem:[#allocation2 + $0x18] sm:$0xff] }
 0x447   :  { %405 = vmatmul.msk.f32.gmra.mxu3 %vm85_vm1, %v315_v0 }
 0x4ca   :  { %v362_v1 = vpop.f32.mrf.mxu3 }
 0x4cb   :  { %v363_v2 = vadd.f32 %v573_v29, %v362_v1 }
 0x4cd   :  { %369 = vst.msk [vmem:[%s632_s7 + $0x18] sm:$0xff] %vm365_vm4, %v363_v2 }
 0x4ce   :  { %433 = dma.done.wait [#allocation4], 64  }
 0x4cf   :  { %434 = vsyncadd [#allocation4], 4294967232 }
 0x4d0   :  { %389 = vsyncpa [#allocation4], 1 }

</bundles_post_ra>
